<compile_context>
chip_gen: v6e
topology: v6e:2x2x1
jax: 0.10.0
libtpu: 0.0.40
codegen_flags: <defaults>
</compile_context>

<pallas_src>
import functools

import jax
import jax.numpy as jnp
from jax import lax
from jax.experimental import pallas as pl
from jax.experimental.pallas import tpu as pltpu


def addnorm_kernel(x_ref, y_ref, gamma_ref, beta_ref, o_ref, *, eps, inv_h):
    # Residual add (dropout == identity in eval mode); upcast to f32 in-kernel.
    s = x_ref[...].astype(jnp.float32) + y_ref[...].astype(jnp.float32)

    # Two-pass mean / variance over the real hidden axis.  Block last dim == H
    # (full array dim), so Mosaic masks lane padding inside the reductions.
    mean = jnp.sum(s, axis=-1, keepdims=True) * inv_h
    d = s - mean
    var = jnp.sum(d * d, axis=-1, keepdims=True) * inv_h
    inv = lax.rsqrt(var + eps)                      # EUP slot; effectively free

    out = d * inv * gamma_ref[...].astype(jnp.float32) \
          + beta_ref[...].astype(jnp.float32)
    o_ref[...] = out.astype(o_ref.dtype)


def _round_up(v, m):
    return ((v + m - 1) // m) * m


def _vmem_caps():
    """(pipeline budget, scoped limit) derived from the actual chip's VMEM."""
    try:
        cap = int(pltpu.get_tpu_info().vmem_capacity_bytes)
    except Exception:
        cap = 64 * 1024 * 1024          # conservative: v7x per-TC physical VMEM
    budget = min(int(cap * 0.50), 48 * 1024 * 1024)   # >=25% headroom everywhere
    limit = min(int(cap * 0.75), 96 * 1024 * 1024)
    return budget, limit


def _pick_grid(rows, h, in_itemsize, out_itemsize, vmem_budget_bytes,
               max_tile_rows=512):
    """Row tile + step count.

    Tile is a multiple of 8, capped at max_tile_rows (roofline plateaus by
    512-1024 rows) and by the VMEM budget; padded-row waste stays < 8 rows per
    step; step count is rounded up to an even number so v7x's two TensorCores
    get a balanced split of the 'parallel' axis.
    """
    h_lanes = _round_up(h, 128)            # physical VMEM lane footprint
    # Per tile row: double-buffered x/y inputs + double-buffered output in the
    # HBM dtypes, plus ~4 f32-wide temporaries the compiler materializes.
    per_row = (2 * 2 * h_lanes * in_itemsize
               + 2 * h_lanes * out_itemsize
               + 4 * h_lanes * 4)
    cap = max(8, min(max_tile_rows, vmem_budget_bytes // per_row))
    cap = max(8, (cap // 8) * 8)

    rows8 = _round_up(rows, 8)
    if rows8 <= cap:
        return rows8, 1                    # single step; boundary rows < 8 wasted
    n = pl.cdiv(rows8, cap)
    n = _round_up(n, 2)                    # even step count -> both v7x TCs busy
    tile = _round_up(pl.cdiv(rows8, n), 8)
    return tile, pl.cdiv(rows, tile)


def add_norm(x, y, gamma, beta, *, eps=1e-5, max_tile_rows=512):
    """x, y: [..., H]; gamma, beta: [H]. Returns LayerNorm(dropout(y) + x)."""
    assert x.shape == y.shape
    orig_shape = x.shape
    H = orig_shape[-1]
    R = x.size // H
    out_dtype = x.dtype

    # Row-major collapses are free (no HBM copies anywhere in the wrapper).
    x2 = x.reshape(R, H)
    y2 = y.reshape(R, H)
    gamma2 = gamma.reshape(1, H)
    beta2 = beta.reshape(1, H)

    vmem_budget, vmem_limit = _vmem_caps()
    tile, n_steps = _pick_grid(R, H, jnp.dtype(x.dtype).itemsize,
                               jnp.dtype(out_dtype).itemsize, vmem_budget,
                               max_tile_rows=max_tile_rows)

    # Very large H can force the row tile small; a third pipeline buffer
    # re-hides the per-step DMA/issue latency in that regime.
    row_spec_kwargs = {}
    if n_steps >= 4 and tile <= 64:
        row_spec_kwargs = dict(pipeline_mode=pl.Buffered(3))

    kernel = functools.partial(addnorm_kernel, eps=float(eps), inv_h=1.0 / float(H))

    out2 = pl.pallas_call(
        kernel,
        out_shape=jax.ShapeDtypeStruct((R, H), out_dtype),
        grid_spec=pltpu.PrefetchScalarGridSpec(
            num_scalar_prefetch=0,
            grid=(n_steps,),
            in_specs=[
                pl.BlockSpec((tile, H), lambda i: (i, 0), **row_spec_kwargs),  # x
                pl.BlockSpec((tile, H), lambda i: (i, 0), **row_spec_kwargs),  # y
                pl.BlockSpec((1, H), lambda i: (0, 0)),                        # gamma
                pl.BlockSpec((1, H), lambda i: (0, 0)),                        # beta
            ],
            out_specs=pl.BlockSpec((tile, H), lambda i: (i, 0)),
        ),
        compiler_params=pltpu.CompilerParams(
            dimension_semantics=("parallel",),
            vmem_limit_bytes=vmem_limit,
        ),
    )(x2, y2, gamma2, beta2)

    return out2.reshape(orig_shape)


def add_norm_ref(x, y, gamma, beta, eps=1e-5):
    s = y.astype(jnp.float32) + x.astype(jnp.float32)
    mean = jnp.mean(s, axis=-1, keepdims=True)
    var = jnp.mean((s - mean) ** 2, axis=-1, keepdims=True)
    out = (s - mean) / jnp.sqrt(var + eps) * gamma.astype(jnp.float32) \
          + beta.astype(jnp.float32)
    return out.astype(x.dtype)


if __name__ == "__main__":
    root_key = jax.random.PRNGKey(0)

    def run_case(case_id, B, S, H, dtype, atol, rtol, **kw):
        kx, ky, kg, kb = jax.random.split(jax.random.fold_in(root_key, case_id), 4)
        x = jax.random.normal(kx, (B, S, H), dtype=jnp.float32).astype(dtype)
        y = jax.random.normal(ky, (B, S, H), dtype=jnp.float32).astype(dtype)
        # PyTorch LayerNorm default init is ones/zeros; perturb deterministically
        # so gamma/beta actually matter.
        gamma = jnp.ones((H,), jnp.float32) + 0.1 * jax.random.normal(kg, (H,), jnp.float32)
        beta = 0.1 * jax.random.normal(kb, (H,), jnp.float32)

        out = jax.block_until_ready(add_norm(x, y, gamma, beta, **kw))
        ref = add_norm_ref(x, y, gamma, beta)
        assert out.shape == x.shape and out.dtype == x.dtype
        assert jnp.allclose(out.astype(jnp.float32), ref.astype(jnp.float32),
                            atol=atol, rtol=rtol), f"mismatch vs reference (case {case_id})"

    # Small demo shape from the module spec (H < 128 exercises the unaligned lane dim).
    run_case(0, 2, 8, 32, jnp.float32, atol=1e-4, rtol=1e-4)
    # Ragged rows + ragged hidden: single partial block in both dims, no padding copies.
    run_case(1, 2, 5, 96, jnp.float32, atol=1e-4, rtol=1e-4)
    # bf16 activations stay bf16 in HBM; upcast happens inside the kernel.
    run_case(2, 2, 8, 128, jnp.bfloat16, atol=5e-2, rtol=5e-2)
    # Multi-step grid with a ragged boundary row block (forced small tile cap).
    run_case(3, 2, 100, 64, jnp.float32, atol=1e-4, rtol=1e-4, max_tile_rows=128)

    print("KERNEL_OK")
</pallas_src>

<mosaic_0001>
module attributes {stable_mosaic.version = 11 : i64} {
  func.func @addnorm_kernel(%arg0: i32, %arg1: memref<16x32xf32, #tpu.memory_space<vmem>>, %arg2: memref<16x32xf32, #tpu.memory_space<vmem>>, %arg3: memref<1x32xf32, #tpu.memory_space<vmem>>, %arg4: memref<1x32xf32, #tpu.memory_space<vmem>>, %arg5: memref<16x32xf32, #tpu.memory_space<vmem>>) attributes {dimension_semantics = [#tpu.dimension_semantics<parallel>], iteration_bounds = array<i64: 1>, scalar_prefetch = 0 : i64, scratch_operands = 0 : i64, tpu.core_type = #tpu.core_type<tc>, window_params = [{transform_indices = @transform_0, window_bounds = array<i64: 16, 32>}, {transform_indices = @transform_1, window_bounds = array<i64: 16, 32>}, {pipeline_mode = #tpu.pipeline_mode<synchronous>, transform_indices = @transform_2, window_bounds = array<i64: 1, 32>}, {pipeline_mode = #tpu.pipeline_mode<synchronous>, transform_indices = @transform_3, window_bounds = array<i64: 1, 32>}, {transform_indices = @transform_4, window_bounds = array<i64: 16, 32>}]} {
    %c0 = arith.constant 0 : index
    %c0_0 = arith.constant 0 : index
    %0 = vector.load %arg1[%c0, %c0_0] : memref<16x32xf32, #tpu.memory_space<vmem>>, vector<16x32xf32>
    %c0_1 = arith.constant 0 : index
    %c0_2 = arith.constant 0 : index
    %1 = vector.load %arg2[%c0_1, %c0_2] : memref<16x32xf32, #tpu.memory_space<vmem>>, vector<16x32xf32>
    %2 = arith.addf %0, %1 : vector<16x32xf32>
    %cst = arith.constant dense<0.000000e+00> : vector<16xf32>
    %3 = vector.multi_reduction <add>, %2, %cst [1] : vector<16x32xf32> to vector<16xf32>
    %4 = vector.shape_cast %3 : vector<16xf32> to vector<16x1xf32>
    %cst_3 = arith.constant 3.125000e-02 : f32
    %5 = vector.broadcast %cst_3 : f32 to vector<16x1xf32>
    %6 = arith.mulf %4, %5 : vector<16x1xf32>
    %7 = vector.broadcast %6 : vector<16x1xf32> to vector<16x32xf32>
    %8 = arith.subf %2, %7 : vector<16x32xf32>
    %9 = arith.mulf %8, %8 : vector<16x32xf32>
    %cst_4 = arith.constant dense<0.000000e+00> : vector<16xf32>
    %10 = vector.multi_reduction <add>, %9, %cst_4 [1] : vector<16x32xf32> to vector<16xf32>
    %11 = vector.shape_cast %10 : vector<16xf32> to vector<16x1xf32>
    %cst_5 = arith.constant 3.125000e-02 : f32
    %12 = vector.broadcast %cst_5 : f32 to vector<16x1xf32>
    %13 = arith.mulf %11, %12 : vector<16x1xf32>
    %cst_6 = arith.constant 9.99999974E-6 : f32
    %14 = vector.broadcast %cst_6 : f32 to vector<16x1xf32>
    %15 = arith.addf %13, %14 : vector<16x1xf32>
    %16 = math.rsqrt %15 : vector<16x1xf32>
    %17 = vector.broadcast %16 : vector<16x1xf32> to vector<16x32xf32>
    %18 = arith.mulf %8, %17 : vector<16x32xf32>
    %c0_7 = arith.constant 0 : index
    %c0_8 = arith.constant 0 : index
    %19 = vector.load %arg3[%c0_7, %c0_8] : memref<1x32xf32, #tpu.memory_space<vmem>>, vector<1x32xf32>
    %20 = vector.broadcast %19 : vector<1x32xf32> to vector<16x32xf32>
    %21 = arith.mulf %18, %20 : vector<16x32xf32>
    %c0_9 = arith.constant 0 : index
    %c0_10 = arith.constant 0 : index
    %22 = vector.load %arg4[%c0_9, %c0_10] : memref<1x32xf32, #tpu.memory_space<vmem>>, vector<1x32xf32>
    %23 = vector.broadcast %22 : vector<1x32xf32> to vector<16x32xf32>
    %24 = arith.addf %21, %23 : vector<16x32xf32>
    %c0_11 = arith.constant 0 : index
    %c0_12 = arith.constant 0 : index
    %25 = vector.load %arg5[%c0_11, %c0_12] : memref<16x32xf32, #tpu.memory_space<vmem>>, vector<16x32xf32>
    tpu.vector_store %arg5[%c0_11, %c0_12], %24 {strides = array<i32>} : memref<16x32xf32, #tpu.memory_space<vmem>>, vector<16x32xf32>,
    return
  }
  func.func @transform_0(%arg0: i32) -> (i32, i32) {
    %c0_i32 = arith.constant 0 : i32
    %c0_i32_0 = arith.constant 0 : i32
    return %arg0, %c0_i32 : i32, i32
  }
  func.func @transform_1(%arg0: i32) -> (i32, i32) {
    %c0_i32 = arith.constant 0 : i32
    %c0_i32_0 = arith.constant 0 : i32
    return %arg0, %c0_i32 : i32, i32
  }
  func.func @transform_2(%arg0: i32) -> (i32, i32) {
    %c0_i32 = arith.constant 0 : i32
    %c0_i32_0 = arith.constant 0 : i32
    %c0_i32_1 = arith.constant 0 : i32
    return %c0_i32, %c0_i32_0 : i32, i32
  }
  func.func @transform_3(%arg0: i32) -> (i32, i32) {
    %c0_i32 = arith.constant 0 : i32
    %c0_i32_0 = arith.constant 0 : i32
    %c0_i32_1 = arith.constant 0 : i32
    return %c0_i32, %c0_i32_0 : i32, i32
  }
  func.func @transform_4(%arg0: i32) -> (i32, i32) {
    %c0_i32 = arith.constant 0 : i32
    %c0_i32_0 = arith.constant 0 : i32
    return %arg0, %c0_i32 : i32, i32
  }
}

</mosaic_0001>

<bundles_post_ra>
// kernel: tpu_custom_call.1
= control target key start
LH: loop header
LB: loop body
LE: loop exit
PB: predicated region body
PF: predicated region fallthrough
CT: control target
= control target key end

     0   :  { %9 = vsyncpa [#allocation3], 0  ;;  %s254_s0 = inlined_call_operand.hbm [shape: f32[16,32], index: 0, kind: input, shape index: {}]   ;;  %s255_s1 = inlined_call_operand.hbm [shape: f32[16,32], index: 1, kind: input, shape index: {}]   ;;  %s256_s2 = inlined_call_operand.vmem [shape: f32[1,32], index: 2, kind: input, shape index: {}]   ;;  %s257_s3 = inlined_call_operand.vmem [shape: f32[1,32], index: 3, kind: input, shape index: {}]   ;;  %s258_s4 = inlined_call_operand.hbm [shape: f32[16,32], index: 4, kind: output, shape index: {}]  }
   0x1   :  { %10 = vsyncpa [#allocation6], 0 }
   0x2   :  { %11 = vsyncpa [#allocation4], 0  ;;  %s194_s15 = smov [#allocation2]  }
   0x3   :  { %s17_s16 = sshll.u32 %s194_s15, 4  ;;  %s18_s16 = int_to_ptr.vmem [resolvable:$true] %s17_s16 }
   0x4   :  { %s136_s17 = scalar_lea.vmem %s18_s16, 256  ;;  %p141_p1 = scmp.lt.s32.totalorder %s18_s16, %s18_s16 }
   0x5   :  { %p137_p0 = scmp.ne.s32.totalorder %s18_s16, %s136_s17  ;;  %p142_p2 = scmp.lt.s32.totalorder %s136_s17, %s136_s17 }
   0x7   :  { %p143_p3 = por %p142_p2, %p141_p1 }
   0x9   :  { %p144_p4 = pnand %p143_p3, %p137_p0 }
   0xb   :  { %147 = shalt.err (!%p144_p4)
}
   0xc   :  { %s195_s18 = smov 128   ;;  %s196_s19 = smov 8  }
   0xd   :  { %23 = dma.hbm_to_vmem [thread:$0]  %s254_s0, 256, %s18_s16, [#allocation3], %s195_s18, %s195_s18, %s196_s19  }
   0xe   :  { %s197_s22 = smov [#allocation5]  }
   0xf   :  { %s29_s23 = sshll.u32 %s197_s22, 4  ;;  %s30_s23 = int_to_ptr.vmem [resolvable:$true] %s29_s23 }
  0x10   :  { %s156_s24 = scalar_lea.vmem %s30_s23, 256  ;;  %p161_p6 = scmp.lt.s32.totalorder %s30_s23, %s30_s23 }
  0x11   :  { %p157_p5 = scmp.ne.s32.totalorder %s30_s23, %s156_s24  ;;  %p162_p7 = scmp.lt.s32.totalorder %s156_s24, %s156_s24 }
  0x13   :  { %p163_p8 = por %p162_p7, %p161_p6 }
  0x15   :  { %p164_p9 = pnand %p163_p8, %p157_p5 }
  0x17   :  { %167 = shalt.err (!%p164_p9)
}
  0x18   :  { %35 = dma.hbm_to_vmem [thread:$0]  %s255_s1, 256, %s30_s23, [#allocation6], %s195_s18, %s195_s18, %s196_s19  }
  0x19   :  { %188 = dma.done.wait [#allocation3], 256  }
  0x1a   :  { %189 = vsyncadd [#allocation3], 4294967040 }
  0x1b   :  { %190 = dma.done.wait [#allocation6], 256  }
  0x1c   :  { %191 = vsyncadd [#allocation6], 4294967040  ;;  %v46_v0 = vld [vmem:[#allocation2] sm:$0xff]  ;;  %v48_v1 = vld [vmem:[#allocation5] sm:$0xff]  ;;  %vm52_vm0 = vcmask 261120   ;;  %s198_s29 = smov [#allocation7]  }
  0x1d   :  { %v47_v2 = vld [vmem:[#allocation2 + $0x8] sm:$0xff]  ;;  %v50_v3 = vadd.f32 %v48_v1, %v46_v0  ;;  %v49_v4 = vld [vmem:[#allocation5 + $0x8] sm:$0xff]  ;;  %v117_v25 = vld [vmem:[%s256_s2] ss:$0 sm:$0xff]  ;;  %s104_s30 = sshll.u32 %s198_s29, 4  ;;  %s105_s30 = int_to_ptr.vmem [resolvable:$true] %s104_s30 }
  0x1e   :  { %v51_v5 = vadd.f32 %v49_v4, %v47_v2  ;;  %v118_v27 = vld [vmem:[%s257_s3] ss:$0 sm:$0xff]  ;;  %s168_s5 = scalar_lea.vmem %s105_s30, 256  ;;  %p173_p11 = scmp.lt.s32.totalorder %s105_s30, %s105_s30 }
  0x1f   :  { %v53_v6 = vsel %vm52_vm0, %v50_v3, 0.0  ;;  %p169_p10 = scmp.ne.s32.totalorder %s105_s30, %s168_s5  ;;  %p174_p12 = scmp.lt.s32.totalorder %s168_s5, %s168_s5 }
  0x20   :  { %54 = vadd.xlane.f32.xlu0 %v53_v6  ;;  %v56_v7 = vsel %vm52_vm0, %v51_v5, 0.0 }
  0x21   :  { %p175_p13 = por %p174_p12, %p173_p11 }
  0x23   :  { %p176_p0 = pnand %p175_p13, %p169_p10 }
  0x24   :  { %57 = vadd.xlane.f32.xlu0 %v56_v7 }
  0xa9   :  { %v55_v8 = vpop.xlane.xlu0 %54 }
  0xaa   :  { %v59_v9 = vmul.f32 0.03125, %v55_v8 }
  0xac   :  { %v61_v10 = vsub.f32 %v50_v3, %v59_v9 }
  0xad   :  { %v58_v11 = vpop.xlane.xlu0 %57 }
  0xae   :  { %v60_v12 = vmul.f32 0.03125, %v58_v11  ;;  %v63_v13 = vmul.f32 %v61_v10, %v61_v10 }
  0xb0   :  { %v62_v14 = vsub.f32 %v51_v5, %v60_v12  ;;  %v65_v15 = vsel %vm52_vm0, %v63_v13, 0.0 }
  0xb1   :  { %66 = vadd.xlane.f32.xlu1 %v65_v15 }
  0xb2   :  { %v64_v16 = vmul.f32 %v62_v14, %v62_v14 }
  0xb4   :  { %v68_v17 = vsel %vm52_vm0, %v64_v16, 0.0 }
  0xb5   :  { %69 = vadd.xlane.f32.xlu1 %v68_v17 }
 0x13a   :  { %v67_v18 = vpop.xlane.xlu1 %66 }
 0x13b   :  { %v71_v19 = vmul.f32 0.03125, %v67_v18 }
 0x13d   :  { %v73_v20 = vadd.f32 1e-05, %v71_v19 }
 0x13e   :  { %v70_v21 = vpop.xlane.xlu1 %69 }
 0x13f   :  { %124 = vrsqrt.f32 %v73_v20  ;;  %v72_v22 = vmul.f32 0.03125, %v70_v21 }
 0x141   :  { %v74_v23 = vadd.f32 1e-05, %v72_v22 }
 0x143   :  { %126 = vrsqrt.f32 %v74_v23 }
 0x14c   :  { %v125_v24 = vpop.eup %124 }
 0x14d   :  { %v77_v26 = vmul.f32 %v125_v24, %v61_v10 }
 0x14f   :  { %v86_v28 = vmul.f32 %v117_v25, %v77_v26 }
 0x150   :  { %v127_v29 = vpop.eup %126 }
 0x151   :  { %v78_v30 = vmul.f32 %v127_v29, %v62_v14  ;;  %v95_v31 = vadd.f32 %v118_v27, %v86_v28 }
 0x153   :  { %v87_v32 = vmul.f32 %v117_v25, %v78_v30  ;;  %97 = vst.msk [vmem:[#allocation7] sm:$0xff] %vm52_vm0, %v95_v31 }
 0x155   :  { %v96_v33 = vadd.f32 %v118_v27, %v87_v32 }
 0x157   :  { %98 = vst.msk [vmem:[#allocation7 + $0x8] sm:$0xff] %vm52_vm0, %v96_v33 }
 0x158   :  { %179 = shalt.err (!%p176_p0)
}
 0x159   :  { %110 = dma.vmem_to_hbm [thread:$0]  %s105_s30, 256, %s258_s4, [#allocation4], %s195_s18, %s195_s18, %s196_s19  }
 0x15a   :  { %192 = dma.done.wait [#allocation4], 256  }
 0x15b   :  { %193 = vsyncadd [#allocation4], 4294967040 }
 0x15c   :  { %114 = vsyncpa [#allocation3], 1 }
 0x15d   :  { %115 = vsyncpa [#allocation6], 1 }
 0x15e   :  { %116 = vsyncpa [#allocation4], 1 }

</bundles_post_ra>
